<compile_context>
chip_gen: v5e
topology: v5e:2x2
jax: 0.10.0
libtpu: 0.0.40
codegen_flags: <defaults>
</compile_context>

<pallas_src>
import jax
import jax.numpy as jnp
from jax import lax
from jax.experimental import pallas as pl
from jax.experimental.pallas import tpu as pltpu


def _round_up(x, m):
    return (x + m - 1) // m * m


# --------------------------------------------------------------------------
# 1) Fused QKV projection kernel: one MXU matmul per row tile, executed once.
# --------------------------------------------------------------------------
def _make_proj_kernel(seq_len, tp, d_pad, need_mask, ind_col, prec, cdtype):
    NEG = -1e9  # additive score mask for padded KV rows; exp() flushes to 0.

    def kernel(a_ref, w_ref, b_ref, q_ref, k_ref, v_ref):
        x = a_ref[0]                                               # (tp, dim_a)
        qkv = jnp.dot(x, w_ref[...],
                      preferred_element_type=jnp.float32, precision=prec)
        qkv = qkv + b_ref[...].astype(jnp.float32)                 # (tp, 2*d_pad+dv_pad)
        # Slices are at multiples of 128 lanes -> no tile-boundary copies.
        q = qkv[:, :d_pad]
        k = qkv[:, d_pad:2 * d_pad]
        v = qkv[:, 2 * d_pad:]

        if need_mask:
            # Reserve one padded lane as an additive mask indicator so the
            # flash kernel needs no per-tile masking at all:
            #   q[:, ind]      = 1
            #   k[valid, ind]  = 0          -> contributes 0 to q @ k^T
            #   k[pad,   ind]  = -1e9       -> padded columns get score -1e9
            col = lax.broadcasted_iota(jnp.int32, (tp, d_pad), 1)
            row = (pl.program_id(1) * tp
                   + lax.broadcasted_iota(jnp.int32, (tp, d_pad), 0))
            q = jnp.where(col == ind_col, 1.0, q)
            k = jnp.where(col == ind_col,
                          jnp.where(row < seq_len, 0.0, NEG), k)

        q_ref[0] = q.astype(cdtype)
        k_ref[0] = k.astype(cdtype)
        v_ref[0] = v.astype(cdtype)

    return kernel


# --------------------------------------------------------------------------
# 2) Flash / online-softmax attention kernel over pre-projected Q/K/V.
# --------------------------------------------------------------------------
def _make_flash_kernel(prec):
    def kernel(q_ref, k_ref, v_ref, o_ref, m_scr, l_scr, acc_scr):
        ki = pl.program_id(2)

        @pl.when(ki == 0)
        def _init():
            m_scr[...] = jnp.full(m_scr.shape, -jnp.inf, m_scr.dtype)
            l_scr[...] = jnp.zeros(l_scr.shape, l_scr.dtype)
            acc_scr[...] = jnp.zeros(acc_scr.shape, acc_scr.dtype)

        q = q_ref[0]                                               # (tq, d_pad)
        k = k_ref[0]                                               # (tk, d_pad)
        v = v_ref[0]                                               # (tk, dv_pad)

        # scores = q @ k^T, contracting the feature axis (no materialized k.T).
        # NOTE: softmax runs on the UNSCALED scores, matching the reference.
        s = lax.dot_general(q, k, (((1,), (1,)), ((), ())),
                            preferred_element_type=jnp.float32,
                            precision=prec)                        # (tq, tk)

        # Online softmax update (padded columns already carry -1e9 -> p == 0).
        # The first KV tile always contains >= 1 valid column, so m_new is
        # finite after step 0 and alpha never becomes NaN.
        m_prev = m_scr[...]
        m_new = jnp.maximum(m_prev, jnp.max(s, axis=-1, keepdims=True))
        p = jnp.exp(s - m_new)
        alpha = jnp.exp(m_prev - m_new)
        l_scr[...] = alpha * l_scr[...] + jnp.sum(p, axis=-1, keepdims=True)
        acc_scr[...] = alpha * acc_scr[...] + jnp.dot(
            p.astype(v.dtype), v,
            preferred_element_type=jnp.float32, precision=prec)
        m_scr[...] = m_new

        @pl.when(ki == pl.num_programs(2) - 1)
        def _finalize():
            # Exact deferred normalization (no approximate reciprocal).
            o_ref[0] = (acc_scr[...] / l_scr[...]).astype(o_ref.dtype)

    return kernel


# --------------------------------------------------------------------------
# Wrapper
# --------------------------------------------------------------------------
def self_attention_pallas(a, wq, bq, wk, bk, wv, bv, *,
                          tq_max=256, tk_max=512, compute_dtype=None):
    """a: (B, N, dim_a); W*: (dim_a, d_*); b*: (d_*,) or (1, d_*). -> (B, N, d_v)."""
    B, N, dim_a = a.shape
    d_k = wq.shape[1]
    d_v = wv.shape[1]
    out_dtype = a.dtype
    cdtype = jnp.dtype(compute_dtype) if compute_dtype is not None else a.dtype
    # Full-accuracy MXU passes for f32 compute (matches the f32 reference).
    prec = lax.Precision.HIGHEST if cdtype == jnp.float32 else None

    # ---- sequence tiling: powers of two with tq | tk | n_pad ----
    # On v6e (128 MiB VMEM) tq_max/tk_max can be raised to 512/1024.
    p2 = pl.next_power_of_2(max(N, 8))
    tk = min(tk_max, p2)
    tq = min(tq_max, tk)
    n_pad = _round_up(N, tk)
    # v7x has 2 TensorCores; only the "parallel" axes shard across them.
    # Make sure B * nq >= 2 whenever the sequence is large enough to split.
    if B * (n_pad // tq) < 2 and tq >= 16:
        tq //= 2
    nq = n_pad // tq
    nk = n_pad // tk
    # Projection row tile: as large as possible (<=512) while dividing n_pad.
    tp = tk
    while tp * 2 <= min(512, n_pad) and n_pad % (tp * 2) == 0:
        tp *= 2

    need_mask = n_pad != N
    # Head dims padded to multiples of 128 (lane-dense MXU operands / stores).
    # When KV rows are padded, reserve one extra lane as the mask indicator.
    d_pad = _round_up(d_k + (1 if need_mask else 0), 128)
    dv_pad = _round_up(d_v, 128)
    ind_col = d_k
    d_tot = 2 * d_pad + dv_pad

    # ---- fused, padded QKV weights / biases (projected in one matmul) ----
    pad_cols = lambda x, c: jnp.pad(x, ((0, 0), (0, c - x.shape[1])))
    bq2 = jnp.reshape(bq, (1, d_k))
    bk2 = jnp.reshape(bk, (1, d_k))
    bv2 = jnp.reshape(bv, (1, d_v))
    w_qkv = jnp.concatenate([pad_cols(wq.astype(cdtype), d_pad),
                             pad_cols(wk.astype(cdtype), d_pad),
                             pad_cols(wv.astype(cdtype), dv_pad)], axis=1)
    b_qkv = jnp.concatenate([pad_cols(bq2, d_pad),
                             pad_cols(bk2, d_pad),
                             pad_cols(bv2, dv_pad)], axis=1).astype(jnp.float32)

    a_p = a.astype(cdtype)
    if need_mask:
        a_p = jnp.pad(a_p, ((0, 0), (0, n_pad - N), (0, 0)))

    # ---- explicit VMEM budget (double-buffered blocks + f32 scratch) ----
    itm = jnp.dtype(cdtype).itemsize
    proj_bytes = 2 * itm * (tp * dim_a + dim_a * d_tot + tp * d_tot) + 2 * 4 * d_tot
    flash_bytes = (2 * itm * (tq * d_pad + tk * (d_pad + dv_pad) + tq * dv_pad)
                   + 4 * tq * (dv_pad + 2))
    vmem_limit = int(min(64 * 1024 * 1024,
                         max(32 * 1024 * 1024, 2 * max(proj_bytes, flash_bytes))))

    # ---- pass 1: project Q/K/V exactly once ----
    proj_kernel = _make_proj_kernel(N, tp, d_pad, need_mask, ind_col, prec, cdtype)
    q_p, k_p, v_p = pl.pallas_call(
        proj_kernel,
        out_shape=(jax.ShapeDtypeStruct((B, n_pad, d_pad), cdtype),
                   jax.ShapeDtypeStruct((B, n_pad, d_pad), cdtype),
                   jax.ShapeDtypeStruct((B, n_pad, dv_pad), cdtype)),
        grid=(B, n_pad // tp),
        in_specs=[
            pl.BlockSpec((1, tp, dim_a), lambda b, i: (b, i, 0)),
            # Constant-index blocks: fetched once (re-copy is skipped when the
            # block index does not change); weights no longer appear at all in
            # the flash kernel below.
            pl.BlockSpec((dim_a, d_tot), lambda b, i: (0, 0)),
            pl.BlockSpec((1, d_tot), lambda b, i: (0, 0)),
        ],
        out_specs=(
            pl.BlockSpec((1, tp, d_pad), lambda b, i: (b, i, 0)),
            pl.BlockSpec((1, tp, d_pad), lambda b, i: (b, i, 0)),
            pl.BlockSpec((1, tp, dv_pad), lambda b, i: (b, i, 0)),
        ),
        compiler_params=pltpu.CompilerParams(
            dimension_semantics=("parallel", "parallel"),
            vmem_limit_bytes=vmem_limit),
    )(a_p, w_qkv, b_qkv)

    # ---- pass 2: flash attention streaming the pre-projected K/V tiles ----
    flash_kernel = _make_flash_kernel(prec)
    out = pl.pallas_call(
        flash_kernel,
        out_shape=jax.ShapeDtypeStruct((B, n_pad, dv_pad), out_dtype),
        grid=(B, nq, nk),
        in_specs=[
            pl.BlockSpec((1, tq, d_pad), lambda b, qi, ki: (b, qi, 0)),
            pl.BlockSpec((1, tk, d_pad), lambda b, qi, ki: (b, ki, 0)),
            pl.BlockSpec((1, tk, dv_pad), lambda b, qi, ki: (b, ki, 0)),
        ],
        out_specs=pl.BlockSpec((1, tq, dv_pad), lambda b, qi, ki: (b, qi, 0)),
        scratch_shapes=[
            pltpu.VMEM((tq, 1), jnp.float32),        # running max m
            pltpu.VMEM((tq, 1), jnp.float32),        # running denom l
            pltpu.VMEM((tq, dv_pad), jnp.float32),   # unnormalized accumulator
        ],
        compiler_params=pltpu.CompilerParams(
            dimension_semantics=("parallel", "parallel", "arbitrary"),
            vmem_limit_bytes=vmem_limit),
    )(q_p, k_p, v_p)

    # Consumers that tolerate the padded (B, n_pad, dv_pad) layout can skip
    # this slice copy (it is the whole write traffic for tiny head dims).
    return out[:, :N, :d_v]


# --------------------------------------------------------------------------
# Pure-JAX reference (mirrors the PyTorch forward; unscaled softmax).
# --------------------------------------------------------------------------
def self_attention_ref(a, wq, bq, wk, bk, wv, bv):
    prec = lax.Precision.HIGHEST
    q = jnp.matmul(a, wq, precision=prec) + jnp.reshape(bq, (1, -1))
    k = jnp.matmul(a, wk, precision=prec) + jnp.reshape(bk, (1, -1))
    v = jnp.matmul(a, wv, precision=prec) + jnp.reshape(bv, (1, -1))
    attention = jnp.matmul(q, jnp.swapaxes(k, -2, -1), precision=prec)
    # attention_scaled is computed but unused in the reference -> omitted.
    attention_softmax = jax.nn.softmax(attention, axis=-1)
    return jnp.matmul(attention_softmax, v, precision=prec)


def _run_case(key, B, N, dim_a, d_k, d_v):
    ka, kq, kbq, kk, kbk, kv_, kbv = jax.random.split(key, 7)
    a = jax.random.normal(ka, (B, N, dim_a), dtype=jnp.float32)
    lim = dim_a ** -0.5
    wq = jax.random.uniform(kq, (dim_a, d_k), jnp.float32, -lim, lim)
    bq = jax.random.uniform(kbq, (1, d_k), jnp.float32, -lim, lim)
    wk = jax.random.uniform(kk, (dim_a, d_k), jnp.float32, -lim, lim)
    bk = jax.random.uniform(kbk, (1, d_k), jnp.float32, -lim, lim)
    wv = jax.random.uniform(kv_, (dim_a, d_v), jnp.float32, -lim, lim)
    bv = jax.random.uniform(kbv, (1, d_v), jnp.float32, -lim, lim)

    out = jax.block_until_ready(self_attention_pallas(a, wq, bq, wk, bk, wv, bv))
    ref = self_attention_ref(a, wq, bq, wk, bk, wv, bv)

    assert out.shape == (B, N, d_v), out.shape
    err = float(jnp.max(jnp.abs(out - ref)))
    assert err < 2e-3, err


if __name__ == "__main__":
    key = jax.random.PRNGKey(0)
    k1, k2 = jax.random.split(key, 2)

    # Small shapes consistent with the module: (B, N, dim_a) input.
    _run_case(k1, B=2, N=8, dim_a=32, d_k=16, d_v=16)
    # Ragged sequence -> exercises the padded-KV (indicator-lane mask) path.
    _run_case(k2, B=1, N=5, dim_a=16, d_k=8, d_v=24)

    print("KERNEL_OK")
</pallas_src>

<mosaic_0001>
module attributes {stable_mosaic.version = 11 : i64} {
  func.func @kernel(%arg0: i32, %arg1: i32, %arg2: memref<1x8x32xf32, #tpu.memory_space<vmem>>, %arg3: memref<32x384xf32, #tpu.memory_space<vmem>>, %arg4: memref<1x384xf32, #tpu.memory_space<vmem>>, %arg5: memref<1x8x128xf32, #tpu.memory_space<vmem>>, %arg6: memref<1x8x128xf32, #tpu.memory_space<vmem>>, %arg7: memref<1x8x128xf32, #tpu.memory_space<vmem>>) attributes {dimension_semantics = [#tpu.dimension_semantics<parallel>, #tpu.dimension_semantics<parallel>], iteration_bounds = array<i64: 2, 1>, scalar_prefetch = 0 : i64, scratch_operands = 0 : i64, tpu.core_type = #tpu.core_type<tc>, window_params = [{transform_indices = @transform_0, window_bounds = array<i64: 1, 8, 32>}, {pipeline_mode = #tpu.pipeline_mode<synchronous>, transform_indices = @transform_1, window_bounds = array<i64: 32, 384>}, {pipeline_mode = #tpu.pipeline_mode<synchronous>, transform_indices = @transform_2, window_bounds = array<i64: 1, 384>}, {transform_indices = @transform_3, window_bounds = array<i64: 1, 8, 128>}, {transform_indices = @transform_4, window_bounds = array<i64: 1, 8, 128>}, {transform_indices = @transform_5, window_bounds = array<i64: 1, 8, 128>}]} {
    %c0 = arith.constant 0 : index
    %c0_0 = arith.constant 0 : index
    %c0_1 = arith.constant 0 : index
    %0 = vector.load %arg2[%c0, %c0_0, %c0_1] : memref<1x8x32xf32, #tpu.memory_space<vmem>>, vector<1x8x32xf32>
    %1 = vector.shape_cast %0 : vector<1x8x32xf32> to vector<8x32xf32>
    %c0_2 = arith.constant 0 : index
    %c0_3 = arith.constant 0 : index
    %2 = vector.load %arg3[%c0_2, %c0_3] : memref<32x384xf32, #tpu.memory_space<vmem>>, vector<32x384xf32>
    %cst = arith.constant dense<0.000000e+00> : vector<8x384xf32>
    %3 = tpu.matmul %1, %2, %cst {dimension_numbers = #tpu.dot_dimension_numbers<[1], [0], [0], [1], [0, 0, 1, 1], [], []>, precision = #tpu.contract_precision<fp32>} : vector<8x32xf32>, vector<32x384xf32>, vector<8x384xf32> -> vector<8x384xf32>
    %c0_4 = arith.constant 0 : index
    %c0_5 = arith.constant 0 : index
    %4 = vector.load %arg4[%c0_4, %c0_5] : memref<1x384xf32, #tpu.memory_space<vmem>>, vector<1x384xf32>
    %5 = vector.broadcast %4 : vector<1x384xf32> to vector<8x384xf32>
    %6 = arith.addf %3, %5 : vector<8x384xf32>
    %7 = vector.extract_strided_slice %6 {offsets = [0, 0], sizes = [8, 128], strides = [1, 1]} : vector<8x384xf32> to vector<8x128xf32>
    %8 = vector.extract_strided_slice %6 {offsets = [0, 128], sizes = [8, 128], strides = [1, 1]} : vector<8x384xf32> to vector<8x128xf32>
    %9 = vector.extract_strided_slice %6 {offsets = [0, 256], sizes = [8, 128], strides = [1, 1]} : vector<8x384xf32> to vector<8x128xf32>
    %c0_6 = arith.constant 0 : index
    %c0_7 = arith.constant 0 : index
    %c0_8 = arith.constant 0 : index
    %10 = vector.load %arg5[%c0_6, %c0_7, %c0_8] : memref<1x8x128xf32, #tpu.memory_space<vmem>>, vector<1x8x128xf32>
    %11 = vector.shape_cast %10 : vector<1x8x128xf32> to vector<8x128xf32>
    %12 = vector.shape_cast %7 : vector<8x128xf32> to vector<1x8x128xf32>
    tpu.vector_store %arg5[%c0_6, %c0_7, %c0_8], %12 {strides = array<i32>} : memref<1x8x128xf32, #tpu.memory_space<vmem>>, vector<1x8x128xf32>,
    %c0_9 = arith.constant 0 : index
    %c0_10 = arith.constant 0 : index
    %c0_11 = arith.constant 0 : index
    %13 = vector.load %arg6[%c0_9, %c0_10, %c0_11] : memref<1x8x128xf32, #tpu.memory_space<vmem>>, vector<1x8x128xf32>
    %14 = vector.shape_cast %13 : vector<1x8x128xf32> to vector<8x128xf32>
    %15 = vector.shape_cast %8 : vector<8x128xf32> to vector<1x8x128xf32>
    tpu.vector_store %arg6[%c0_9, %c0_10, %c0_11], %15 {strides = array<i32>} : memref<1x8x128xf32, #tpu.memory_space<vmem>>, vector<1x8x128xf32>,
    %c0_12 = arith.constant 0 : index
    %c0_13 = arith.constant 0 : index
    %c0_14 = arith.constant 0 : index
    %16 = vector.load %arg7[%c0_12, %c0_13, %c0_14] : memref<1x8x128xf32, #tpu.memory_space<vmem>>, vector<1x8x128xf32>
    %17 = vector.shape_cast %16 : vector<1x8x128xf32> to vector<8x128xf32>
    %18 = vector.shape_cast %9 : vector<8x128xf32> to vector<1x8x128xf32>
    tpu.vector_store %arg7[%c0_12, %c0_13, %c0_14], %18 {strides = array<i32>} : memref<1x8x128xf32, #tpu.memory_space<vmem>>, vector<1x8x128xf32>,
    return
  }
  func.func @transform_0(%arg0: i32, %arg1: i32) -> (i32, i32, i32) {
    %c0_i32 = arith.constant 0 : i32
    %c0_i32_0 = arith.constant 0 : i32
    return %arg0, %arg1, %c0_i32 : i32, i32, i32
  }
  func.func @transform_1(%arg0: i32, %arg1: i32) -> (i32, i32) {
    %c0_i32 = arith.constant 0 : i32
    %c0_i32_0 = arith.constant 0 : i32
    %c0_i32_1 = arith.constant 0 : i32
    return %c0_i32, %c0_i32_0 : i32, i32
  }
  func.func @transform_2(%arg0: i32, %arg1: i32) -> (i32, i32) {
    %c0_i32 = arith.constant 0 : i32
    %c0_i32_0 = arith.constant 0 : i32
    %c0_i32_1 = arith.constant 0 : i32
    return %c0_i32, %c0_i32_0 : i32, i32
  }
  func.func @transform_3(%arg0: i32, %arg1: i32) -> (i32, i32, i32) {
    %c0_i32 = arith.constant 0 : i32
    %c0_i32_0 = arith.constant 0 : i32
    return %arg0, %arg1, %c0_i32 : i32, i32, i32
  }
  func.func @transform_4(%arg0: i32, %arg1: i32) -> (i32, i32, i32) {
    %c0_i32 = arith.constant 0 : i32
    %c0_i32_0 = arith.constant 0 : i32
    return %arg0, %arg1, %c0_i32 : i32, i32, i32
  }
  func.func @transform_5(%arg0: i32, %arg1: i32) -> (i32, i32, i32) {
    %c0_i32 = arith.constant 0 : i32
    %c0_i32_0 = arith.constant 0 : i32
    return %arg0, %arg1, %c0_i32 : i32, i32, i32
  }
}

</mosaic_0001>

<bundles_post_ra>
// kernel: tpu_custom_call.1
= control target key start
LH: loop header
LB: loop body
LE: loop exit
PB: predicated region body
PF: predicated region fallthrough
CT: control target
= control target key end

     0   :  { %11 = vsyncpa [#allocation3], 0  ;;  %s1828_s0 = inlined_call_operand.hbm [shape: f32[2,8,32], index: 0, kind: input, shape index: {}]   ;;  %s1829_s1 = inlined_call_operand.hbm [shape: f32[32,384], index: 1, kind: input, shape index: {}]   ;;  %s1830_s2 = inlined_call_operand.hbm [shape: f32[1,384], index: 2, kind: input, shape index: {}]   ;;  %s1831_s3 = inlined_call_operand.hbm [shape: f32[2,8,128], index: 3, kind: output, shape index: {0}]   ;;  %s1832_s4 = inlined_call_operand.hbm [shape: f32[2,8,128], index: 4, kind: output, shape index: {1}]   ;;  %s1833_s5 = inlined_call_operand.hbm [shape: f32[2,8,128], index: 5, kind: output, shape index: {2}]  }
   0x1   :  { %13 = vsyncpa [#allocation3 + $0x1], 0 }
   0x2   :  { %14 = vsyncpa [#allocation6], 0 }
   0x3   :  { %15 = vsyncpa [#allocation4], 0 }
   0x4   :  { %17 = vsyncpa [#allocation4 + $0x1], 0 }
   0x5   :  { %18 = vsyncpa [#allocation10], 0 }
   0x6   :  { %20 = vsyncpa [#allocation10 + $0x1], 0  ;;  %s1506_s18 = smov 0   ;;  %s1508_s19 = smov 0  }
   0x7   :  { %s1510_s20 = smov 0   ;;  %s1512_s21 = smov 0  }
   0x8   :  { %s1514_s22 = smov 0   ;;  %s1516_s23 = smov 0  }
   0x9 LB: > { %s1537_s24 = sadd.s32 4294967295, %s1470_s23   ;;  %p1118_p0 = scmp.ge.s32.totalorder %s1470_s23, 1  ;;  %s1470_s23 = sphi %s1516_s23, %s26_s23   ;;  %s1466_s22 = sphi %s1514_s22, %s1844_s22   ;;  %s1462_s21 = sphi %s1512_s21, %s1843_s21   ;;  %s1458_s20 = sphi %s1510_s20, %s1842_s20   ;;  %s1454_s19 = sphi %s1508_s19, %s1841_s19   ;;  %s1450_s18 = sphi %s1506_s18, %s1840_s18  }
   0xa   : > { %p61_p1 = scmp.eq.s32.totalorder %s1537_s24, 0  ;;  %p197_p2 = scmp.lt.s32.totalorder %s1470_s23, 3 }
   0xb   : > { %s208_s27 = sshll.u32 %s1829_s1, 4  ;;  %s1472_s29 = smov [#allocation5]   ;;  %s209_s27 = int_to_ptr.hbm [resolvable:$true] %s208_s27 }
   0xc   : > { %p1545_p3 = pnand %p1118_p0, %p197_p2  ;;  %s210_s30 = sshll.u32 %s1472_s29, 4  ;;  %s211_s30 = int_to_ptr.vmem [resolvable:$true] %s210_s30 }
   0xd   : > { %p1121_p6 = scmp.ge.s32.totalorder %s1470_s23, 2  ;;  %s223_s8 = sshll.u32 %s1830_s2, 4  ;;  %s224_s8 = int_to_ptr.hbm [resolvable:$true] %s223_s8 }
   0xe   : > { %p1155_p4 = pneg %p1545_p3  ;;  %s1473_s9 = smov 384  }
   0xf   : > { %s1474_s10 = smov 24   ;;  %s1475_s11 = smov [#allocation7]  }
  0x10   : > { %p1156_p5 = pnand %p1155_p4, %p61_p1  ;;  %s225_s12 = sshll.u32 %s1475_s11, 4  ;;  %s226_s12 = int_to_ptr.vmem [resolvable:$true] %s225_s12 }
  0x11   : > { %s38_s13 = sadd.s32 1, %s1466_s22  ;;  %s1834_s14 = sadd.s32 4294967294, %s1470_s23  }
  0x12   : > { %1158 = dma.hbm_to_vmem [thread:$0]  (!%p1156_p5), %s209_s27, 1536, %s211_s30, [#allocation6], %s1473_s9, %s1473_s9, %s1474_s10  }
  0x13   : > { %1161 = dma.hbm_to_vmem [thread:$0]  (!%p1156_p5), %s224_s8, 48, %s226_s12, [#allocation6]  }
  0x14   : > { %p40_p7 = scmp.ge.s32.totalorder %s38_s13, 2  ;;  %s47_s15 = sadd.s32 1, %s1458_s20 }
  0x15   : > { %p54_p8 = scmp.ne.s32.totalorder %s1458_s20, %s1454_s19  ;;  %p55_p9 = scmp.eq.s32.totalorder %s1470_s23, 0 }
  0x16   : > { %s1846_s13 = smov (%p40_p7, %s38_s13), 0  ;;  %p60_p10 = scmp.ne.s32.totalorder %s1454_s19, %s1450_s18 }
  0x17   : > { %s42_s16 = ssub.s32 %s1466_s22, %s1846_s13  ;;  %p128_p11 = scmp.eq.s32.totalorder %s1537_s24, 1 }
  0x18   : > { %p45_p12 = scmp.eq.s32.totalorder %s42_s16, 0  ;;  %p1572_p13 = por %p61_p1, %p60_p10 }
  0x19   : > { %p1576_p0 = por %p128_p11, %p54_p8  ;;  %p134_p2 = scmp.eq.s32.totalorder %s1834_s14, 1 }
  0x1a   : > { %s1583_s26 = scalar_select %p45_p12, %s1458_s20, %s47_s15  }
  0x1b   : > { %p56_p4 = por %p55_p9, %p54_p8  ;;  %p1585_p5 = por %p134_p2, %p60_p10 }
  0x1c   : > { %s236_s29 = sand.u32 1, %s1458_s20   ;;  %s1123_s30 = sshll.u32 %s1466_s22, 3 }
  0x1d   : > { %p1178_p7 = scmp.lt.s32.totalorder %s1470_s23, 2  ;;  %s1122_s6 = sshll.u32 %s236_s29, 3 }
  0x1e   : > { %s245_s9 = scalar_lea.hbm %s1828_s0, %s1123_s30  ;;  %s240_s11 = scalar_lea.vmem [#allocation2], %s1122_s6 }
  0x1f   : > { %s247_s10 = sshll.u32 %s245_s9, 4  ;;  %s249_s12 = sshll.u32 %s240_s11, 4  ;;  %s248_s10 = int_to_ptr.hbm [resolvable:$true] %s247_s10  ;;  %s250_s12 = int_to_ptr.vmem [resolvable:$true] %s249_s12 }
  0x20   : > { %p1163_p11 = pnand %p1178_p7, %p56_p4  ;;  %s237_s15 = scalar_lea.sflag [#allocation3], %s236_s29 }
  0x21   : > { %258 = sbr.rel (%p1545_p3) target bundleno = 228 (0xe4), region = 32  ;;  %s1598_s16 = sand.u32 (!%p1545_p3), 1, %s1454_s19  }
  0x22   : > { %1165 = dma.hbm_to_vmem [thread:$0]  (!%p1163_p11), %s248_s10, 128, %s250_s12, %s237_s15  }
  0x23   : > { %s1601_s14 = sshll.u32 (!%p1545_p3), %s1598_s16, 3  ;;  %s261_s30 = scalar_lea.sflag (!%p1545_p3), [#allocation3], %s1598_s16 }
  0x24   : > { %s264_s6 = scalar_lea.vmem (!%p1545_p3), [#allocation2], %s1601_s14 }
  0x26   : > { %1433 = dma.done.wait (%p1572_p13), %s261_s30, 128  }
  0x27   : > { %1435 = vsyncadd (%p1572_p13), %s261_s30, 4294967168 }
  0x28   : > { %1437 = dma.done.wait (%p61_p1), [#allocation6], 1584  }
  0x29   : > { %1439 = vsyncadd (%p61_p1), [#allocation6], 4294965712  ;;  %vm333_vm0 = vcmask 261120   ;;  %v322_v0 = vld [vmem:[#allocation5 + $0x48] sm:$0xff]  ;;  %v319_v1 = vld [vmem:[#allocation5 + $0x30] sm:$0xff]  ;;  %s1750_s28 = sshll.u32 %s1462_s21, 3 }
  0x2a   : > { %v316_v2 = vld [vmem:[#allocation5 + $0x18] sm:$0xff]  ;;  %v1613_v3 = vand.u32 4294901760, %v322_v0  ;;  %v1615_v4 = vand.u32 4294901760, %v319_v1  ;;  %v313_v6 = vld [vmem:[#allocation5] sm:$0xff]  ;;  %v323_v8 = vld [vmem:[#allocation5 + $0x50] sm:$0xff]  ;;  %s917_s7 = scalar_lea.hbm %s1831_s3, %s1750_s28  ;;  %s297_s8 = scalar_lea.vmem [#allocation8], %s1601_s14 }
  0x2b   : > { %v1617_v5 = vand.u32 4294901760, %v316_v2  ;;  %v312_v7 = vld [vmem:[%s264_s6] sm:$0xff]  ;;  %v1619_v9 = vand.u32 4294901760, %v313_v6  ;;  %v1621_v11 = vand.u32 4294901760, %v323_v8  ;;  %v317_v13 = vld [vmem:[#allocation5 + $0x20] sm:$0xff]  ;;  %v314_v18 = vld [vmem:[#allocation5 + $0x8] sm:$0xff] }
  0x2c   : > { %v335_v10 = vsel %vm333_vm0, %v312_v7, 0  ;;  %v320_v12 = vld [vmem:[#allocation5 + $0x38] sm:$0xff]  ;;  %v379_v14 = vsub.f32 %v322_v0, %v1613_v3  ;;  %350 = vmatpush.msra.mxu0 %v1613_v3  ;;  %v385_v15 = vsub.f32 %v319_v1, %v1615_v4  ;;  %450 = vmatpush.msra.mxu3 %v1613_v3  ;;  %v1640_v22 = vand.u32 4294901760, %v317_v13  ;;  %v321_v55 = vld [vmem:[#allocation5 + $0x40] sm:$0xff]  ;;  %v318_v58 = vld [vmem:[#allocation5 + $0x28] sm:$0xff]  ;;  %s919_s9 = sshll.u32 %s297_s8, 4  ;;  %s920_s9 = int_to_ptr.vmem [resolvable:$true] %s919_s9 }
  0x2d   : > { %v1628_v16 = vsub.f32 %v316_v2, %v1617_v5  ;;  %v1630_v17 = vand.u32 4294901760, %v335_v10  ;;  %v1633_v19 = vsub.f32 %v313_v6, %v1619_v9  ;;  %v1635_v20 = vand.u32 4294901760, %v320_v12  ;;  %v324_v52 = vld [vmem:[#allocation5 + $0x58] sm:$0xff]  ;;  %v315_v60 = vld [vmem:[#allocation5 + $0x10] sm:$0xff]  ;;  %s921_s10 = sshll.u32 %s917_s7, 4  ;;  %s896_s21 = scalar_lea.sflag [#allocation4], %s1598_s16  ;;  %s922_s10 = int_to_ptr.hbm [resolvable:$true] %s921_s10 }
  0x2e   : > { %v1638_v21 = vsub.f32 %v323_v8, %v1621_v11  ;;  %421 = vmatpush.msra.mxu2 %v379_v14  ;;  %352 = vmatpush.msra.mxu0 %v1615_v4  ;;  %v380_v23 = vand.u32 4294901760, %v379_v14  ;;  %v386_v24 = vand.u32 4294901760, %v385_v15  ;;  %v1653_v30 = vand.u32 4294901760, %v314_v18  ;;  %s1338_s11 = sshra.s32 %s922_s10, 4  ;;  %s1344_s6 = scalar_lea.hbm %s1831_s3, 16  ;;  %s1339_s11 = int_to_ptr.hbm [resolvable:$true] %s1338_s11 }
  0x2f   : > { %v1644_v25 = vsub.f32 %v335_v10, %v1630_v17  ;;  %v392_v26 = vand.u32 4294901760, %v1628_v16  ;;  %452 = vmatpush.msra.mxu3 %v1615_v4  ;;  %v398_v28 = vand.u32 4294901760, %v1633_v19  ;;  %v1651_v29 = vsub.f32 %v320_v12, %v1635_v20  ;;  %s1340_s12 = scalar_lea.hbm %s1339_s11, 8  ;;  %p1345_p9 = scmp.lt.s32.totalorder %s1339_s11, %s1831_s3 }
  0x30   : > { %v565_v27 = vand.u32 4294901760, %v1638_v21  ;;  %424 = vmatpush.msra.mxu2 %v385_v15  ;;  %v381_v31 = vsub.f32 %v379_v14, %v380_v23  ;;  %354 = vmatpush.msra.mxu0 %v1617_v5  ;;  %v387_v32 = vsub.f32 %v385_v15, %v386_v24  ;;  %v1666_v37 = vsub.f32 %v317_v13, %v1640_v22  ;;  %v325_v15 = vld [vmem:[#allocation7] sm:$0x7]  ;;  %p1341_p1 = scmp.ne.s32.totalorder %s1339_s11, %s1340_s12  ;;  %p1346_p10 = scmp.lt.s32.totalorder %s1344_s6, %s1340_s12 }
  0x31   : > { %v393_v33 = vsub.f32 %v1628_v16, %v392_v26  ;;  %v1658_v34 = vand.u32 4294901760, %v1644_v25  ;;  %454 = vmatpush.msra.mxu3 %v1617_v5  ;;  %v571_v36 = vand.u32 4294901760, %v1651_v29  ;;  %v399_v41 = vsub.f32 %v1633_v19, %v398_v28 }
  0x32   : > { %v566_v35 = vsub.f32 %v1638_v21, %v565_v27  ;;  %v382_v38 = vand.u32 4294901760, %v381_v31  ;;  %427 = vmatpush.msra.mxu2 %v1628_v16  ;;  %v388_v39 = vand.u32 4294901760, %v387_v32  ;;  %356 = vmatpush.msra.mxu0 %v1619_v9  ;;  %v577_v44 = vand.u32 4294901760, %v1666_v37  ;;  %p1342_p3 = pnand %p1341_p1, %p1576_p0  ;;  %p1347_p12 = por %p1346_p10, %p1345_p9 }
  0x33   : > { %v360_v40 = vsub.f32 %v1644_v25, %v1658_v34  ;;  %456 = vmatpush.msra.mxu3 %v1619_v9  ;;  %v572_v43 = vsub.f32 %v1651_v29, %v571_v36  ;;  %v394_v45 = vand.u32 4294901760, %v393_v33  ;;  %v582_v47 = vsub.f32 %v314_v18, %v1653_v30 }
  0x34   : > { %479 = vmatpush.msrb.mxu0 %v380_v23  ;;  %v567_v42 = vand.u32 4294901760, %v566_v35  ;;  %383 = vmatpush.msra.mxu1 %v382_v38  ;;  %v578_v49 = vsub.f32 %v1666_v37, %v577_v44  ;;  %v400_v50 = vand.u32 4294901760, %v399_v41  ;;  %v1687_v56 = vand.u32 4294901760, %v324_v52  ;;  %p1343_p8 = pneg %p1342_p3 }
  0x35   : > { %430 = vmatpush.msra.mxu2 %v1633_v19  ;;  %v1677_v46 = vand.u32 4294901760, %v360_v40  ;;  %460 = vmatmul.f32.vlgmr.msra.gmra.mxu3 %v1658_v34  ;;  %v573_v48 = vand.u32 4294901760, %v572_v43  ;;  %v583_v51 = vand.u32 4294901760, %v582_v47  ;;  %v1692_v59 = vand.u32 4294901760, %v321_v55 }
  0x36   : > { %433 = vmatmul.f32.vlgmr.msra.gmra.mxu2 %v1644_v25  ;;  %389 = vmatpush.msra.mxu1 %v388_v39  ;;  %v579_v54 = vand.u32 4294901760, %v578_v49  ;;  %v1697_v61 = vsub.f32 %v324_v52, %v1687_v56  ;;  %v1699_v62 = vand.u32 4294901760, %v318_v58  ;;  %v1706_v0 = vand.u32 4294901760, %v315_v60  ;;  %p1348_p13 = pnand %p1347_p12, %p1343_p8 }
  0x37   : > { %535 = vmatpush.msrb.mxu2 %v1621_v11  ;;  %362 = vmatmul.f32.vlgmr.msra.gmra.mxu0 %v1677_v46  ;;  %v584_v53 = vsub.f32 %v582_v47, %v583_v51  ;;  %v755_v63 = vsub.f32 %v321_v55, %v1692_v59  ;;  %v327_v16 = vperm.slane %v325_v15, 0 }
  0x38   : > { %568 = vmatpush.msrb.mxu3 %v567_v42  ;;  %395 = vmatpush.msra.mxu1 %v394_v45  ;;  %v750_v1 = vand.u32 4294901760, %v1697_v61  ;;  %v761_v2 = vsub.f32 %v318_v58, %v1699_v62 }
  0x39   : > { %537 = vmatpush.msrb.mxu2 %v1635_v20  ;;  %483 = vmatpush.msrb.mxu0 %v386_v24  ;;  %v585_v57 = vand.u32 4294901760, %v584_v53 }
  0x3a   : > { %574 = vmatpush.msrb.mxu3 %v573_v48  ;;  %401 = vmatpush.msra.mxu1 %v400_v50  ;;  %v762_v6 = vand.u32 4294901760, %v761_v2 }
  0x3b   : > { %539 = vmatpush.msrb.mxu2 %v1640_v22  ;;  %403 = vmatmul.f32.vlgmr.msra.gmra.mxu1 %v1630_v17 }
  0x3c   : > { %487 = vmatpush.msrb.mxu0 %v392_v26  ;;  %510 = vmatpush.msrb.mxu1 %v1613_v3  ;;  %v756_v3 = vand.u32 4294901760, %v755_v63  ;;  %v763_v10 = vsub.f32 %v761_v2, %v762_v6 }
  0x3d   : > { %541 = vmatpush.msrb.mxu2 %v1653_v30  ;;  %580 = vmatpush.msrb.mxu3 %v579_v54 }
  0x3e   : > { %491 = vmatpush.msrb.mxu0 %v398_v28  ;;  %512 = vmatpush.msrb.mxu1 %v1615_v4  ;;  %v767_v4 = vsub.f32 %v315_v60, %v1706_v0  ;;  %v757_v7 = vsub.f32 %v755_v63, %v756_v3  ;;  %v764_v13 = vand.u32 4294901760, %v763_v10 }
  0x3f   : > { %547 = vmatmul.f32.vlgmr.msrb.gmra.mxu2 %v1677_v46  ;;  %586 = vmatpush.msrb.mxu3 %v585_v57 }
  0x40   : > { %664 = vmatpush.msra.mxu2 %v565_v27  ;;  %514 = vmatpush.msrb.mxu1 %v1617_v5  ;;  %v751_v5 = vsub.f32 %v1697_v61, %v750_v1  ;;  %v768_v8 = vand.u32 4294901760, %v767_v4 }
  0x41   : > { %493 = vmatmul.f32.vlgmr.msrb.gmra.mxu0 %v1630_v17  ;;  %588 = vmatmul.f32.vlgmr.msrb.gmra.mxu3 %v1630_v17 }
  0x42   : > { %606 = vmatpush.msra.mxu0 %v1638_v21  ;;  %516 = vmatpush.msrb.mxu1 %v1619_v9  ;;  %v752_v9 = vand.u32 4294901760, %v751_v5  ;;  %v769_v12 = vsub.f32 %v767_v4, %v768_v8 }
  0x43   : > { %668 = vmatpush.msra.mxu2 %v571_v36  ;;  %695 = vmatpush.msra.mxu3 %v1621_v11 }
  0x44   : > { %518 = vmatmul.f32.vlgmr.msrb.gmra.mxu1 %v1630_v17  ;;  %609 = vmatpush.msra.mxu0 %v1651_v29  ;;  %v770_v14 = vand.u32 4294901760, %v769_v12 }
  0x45   : > { %635 = vmatpush.msra.mxu1 %v1621_v11  ;;  %672 = vmatpush.msra.mxu2 %v577_v44  ;;  %v758_v11 = vand.u32 4294901760, %v757_v7 }
  0x46   : > { %697 = vmatpush.msra.mxu3 %v1635_v20  ;;  %612 = vmatpush.msra.mxu0 %v1666_v37 }
  0x47   : > { %637 = vmatpush.msra.mxu1 %v1635_v20  ;;  %676 = vmatpush.msra.mxu2 %v583_v51 }
  0x48   : > { %699 = vmatpush.msra.mxu3 %v1640_v22  ;;  %615 = vmatpush.msra.mxu0 %v582_v47 }
  0x49   : > { %639 = vmatpush.msra.mxu1 %v1640_v22  ;;  %678 = vmatmul.f32.vlgmr.msra.gmra.mxu2 %v1630_v17 }
  0x4a   : > { %701 = vmatpush.msra.mxu3 %v1653_v30  ;;  %791 = vmatpush.msrb.mxu2 %v1697_v61 }
  0x4b   : > { %618 = vmatmul.f32.vlgmr.msra.gmra.mxu0 %v1644_v25  ;;  %641 = vmatpush.msra.mxu1 %v1653_v30 }
  0x4c   : > { %703 = vmatmul.f32.vlgmr.msra.gmra.mxu3 %v1630_v17  ;;  %720 = vmatpush.msrb.mxu0 %v1687_v56 }
  0x4d   : > { %794 = vmatpush.msrb.mxu2 %v755_v63  ;;  %820 = vmatpush.msrb.mxu3 %v1687_v56 }
  0x4e   : > { %645 = vmatmul.f32.vlgmr.msra.gmra.mxu1 %v1658_v34  ;;  %722 = vmatpush.msrb.mxu0 %v1692_v59 }
  0x4f   : > { %753 = vmatpush.msrb.mxu1 %v752_v9  ;;  %797 = vmatpush.msrb.mxu2 %v761_v2 }
  0x50   : > { %822 = vmatpush.msrb.mxu3 %v1692_v59  ;;  %724 = vmatpush.msrb.mxu0 %v1699_v62 }
  0x51   : > { %759 = vmatpush.msrb.mxu1 %v758_v11  ;;  %800 = vmatpush.msrb.mxu2 %v767_v4 }
  0x52   : > { %824 = vmatpush.msrb.mxu3 %v1699_v62  ;;  %726 = vmatpush.msrb.mxu0 %v1706_v0 }
  0x53   : > { %765 = vmatpush.msrb.mxu1 %v764_v13  ;;  %803 = vmatmul.f32.vlgmr.msrb.gmra.mxu2 %v1644_v25 }
  0x54   : > { %826 = vmatpush.msrb.mxu3 %v1706_v0  ;;  %732 = vmatmul.f32.vlgmr.msrb.gmra.mxu0 %v1677_v46 }
  0x55   : > { %771 = vmatpush.msrb.mxu1 %v770_v14  ;;  %830 = vmatmul.f32.vlgmr.msrb.gmra.mxu3 %v1658_v34 }
  0x56   : > { %849 = vmatpush.msra.mxu0 %v750_v1  ;;  %773 = vmatmul.f32.vlgmr.msrb.gmra.mxu1 %v1630_v17 }
  0x57   : > { %880 = vmatpush.msra.mxu1 %v1687_v56 }
  0x58   : > { %853 = vmatpush.msra.mxu0 %v756_v3 }
  0x59   : > { %882 = vmatpush.msra.mxu1 %v1692_v59 }
  0x5a   : > { %857 = vmatpush.msra.mxu0 %v762_v6 }
  0x5b   : > { %884 = vmatpush.msra.mxu1 %v1699_v62 }
  0x5c   : > { %861 = vmatpush.msra.mxu0 %v768_v8 }
  0x5d   : > { %863 = vmatmul.f32.vlgmr.msra.gmra.mxu0 %v1630_v17  ;;  %886 = vmatpush.msra.mxu1 %v1706_v0 }
  0x5e   : > { %888 = vmatmul.f32.vlgmr.msra.gmra.mxu1 %v1630_v17  ;;  %v328_v17 = vperm.slane %v325_v15, 1 }
  0xb4   : > { %v363_v18 = vpop.f32.mrf.mxu0 }
  0xb5   : > { %v364_v19 = vadd.f32 %v363_v18, %v327_v16 }
  0xb8   : > { %v404_v20 = vpop.f32.mrf.mxu1  ;;  %v461_v23 = vpop.f32.mrf.mxu3 }
  0xb9   : > { %v434_v21 = vpop.f32.mrf.mxu2  ;;  %v405_v22 = vadd.f32 %v404_v20, %v364_v19 }
  0xbb   : > { %v435_v24 = vadd.f32 %v434_v21, %v405_v22 }
  0xbd   : > { %v462_v25 = vadd.f32 %v461_v23, %v435_v24 }
  0xbe   : > { %v494_v26 = vpop.f32.mrf.mxu0 }
  0xbf   : > { %v495_v27 = vadd.f32 %v494_v26, %v462_v25 }
  0xc1   : > { %v519_v28 = vpop.f32.mrf.mxu1 }
  0xc2   : > { %v520_v29 = vadd.f32 %v519_v28, %v495_v27  ;;  %v548_v30 = vpop.f32.mrf.mxu2 }
  0xc3   : > { %v549_v31 = vadd.f32 %v548_v30, %v328_v17 }
  0xc4   : > { %892 = vst [vmem:[%s297_s8] sm:$0xff] %v520_v29  ;;  %v589_v32 = vpop.f32.mrf.mxu3 }
  0xc5   : > { %1351 = shalt.err (!%p1348_p13)
}
  0xc6   : > { %1149 = dma.vmem_to_hbm [thread:$0]  (%p1576_p0), %s920_s9, 128, %s922_s10, %s896_s21   ;;  %v590_v33 = vadd.f32 %v589_v32, %v549_v31  ;;  %v329_v41 = vperm.slane %v325_v15, 2 }
  0xc7   : > { %s932_s8 = scalar_lea.hbm %s1832_s4, %s1750_s28  ;;  %s900_s11 = sand.u32 1, %s1537_s24  }
  0xc8   : > { %v619_v34 = vpop.f32.mrf.mxu0  ;;  %s304_s12 = scalar_lea.vmem [#allocation9], %s1601_s14  ;;  %s936_s30 = sshll.u32 %s932_s8, 4  ;;  %s937_s30 = int_to_ptr.hbm [resolvable:$true] %s936_s30 }
  0xc9   : > { %v620_v35 = vadd.f32 %v619_v34, %v590_v33  ;;  %s934_s15 = sshll.u32 %s304_s12, 4  ;;  %s1774_s9 = scalar_lea.sflag [#allocation10], %s900_s11  ;;  %s935_s15 = int_to_ptr.vmem [resolvable:$true] %s934_s15 }
  0xca   : > { %s1366_s10 = sshra.s32 %s937_s30, 4  ;;  %s1372_s17 = scalar_lea.hbm %s1832_s4, 16  ;;  %s1367_s10 = int_to_ptr.hbm [resolvable:$true] %s1366_s10 }
  0xcb   : > { %v646_v36 = vpop.f32.mrf.mxu1  ;;  %s1368_s21 = scalar_lea.hbm %s1367_s10, 8  ;;  %p1373_p11 = scmp.lt.s32.totalorder %s1367_s10, %s1832_s4 }
  0xcc   : > { %v647_v37 = vadd.f32 %v646_v36, %v620_v35  ;;  %v679_v38 = vpop.f32.mrf.mxu2  ;;  %p1369_p2 = scmp.ne.s32.totalorder %s1367_s10, %s1368_s21  ;;  %p1374_p1 = scmp.lt.s32.totalorder %s1372_s17, %s1368_s21 }
  0xce   : > { %v680_v39 = vadd.f32 %v679_v38, %v647_v37  ;;  %p1370_p4 = pnand %p1369_p2, %p1576_p0  ;;  %p1375_p3 = por %p1374_p1, %p1373_p11 }
  0xcf   : > { %v704_v40 = vpop.f32.mrf.mxu3 }
  0xd0   : > { %v705_v42 = vadd.f32 %v704_v40, %v680_v39  ;;  %p1371_p7 = pneg %p1370_p4 }
  0xd1   : > { %v733_v43 = vpop.f32.mrf.mxu0 }
  0xd2   : > { %893 = vst [vmem:[%s304_s12] sm:$0xff] %v705_v42  ;;  %v734_v44 = vadd.f32 %v733_v43, %v329_v41  ;;  %p1376_p8 = pnand %p1375_p3, %p1371_p7 }
  0xd4   : > { %1379 = shalt.err (!%p1376_p8)
}
  0xd5   : > { %1150 = dma.vmem_to_hbm [thread:$0]  (%p1576_p0), %s935_s15, 128, %s937_s30, %s1774_s9   ;;  %v774_v45 = vpop.f32.mrf.mxu1 }
  0xd6   : > { %v775_v46 = vadd.f32 %v774_v45, %v734_v44  ;;  %v804_v47 = vpop.f32.mrf.mxu2  ;;  %s947_s11 = scalar_lea.hbm %s1833_s5, %s1750_s28  ;;  %s311_s12 = scalar_lea.vmem [#allocation11], %s1601_s14 }
  0xd7   : > { %s949_s10 = sshll.u32 %s311_s12, 4  ;;  %s951_s21 = sshll.u32 %s947_s11, 4  ;;  %s950_s10 = int_to_ptr.vmem [resolvable:$true] %s949_s10  ;;  %s952_s21 = int_to_ptr.hbm [resolvable:$true] %s951_s21 }
  0xd8   : > { %v805_v48 = vadd.f32 %v804_v47, %v775_v46  ;;  %v831_v49 = vpop.f32.mrf.mxu3  ;;  %s1394_s15 = sshra.s32 %s952_s21, 4  ;;  %s1400_s6 = scalar_lea.hbm %s1833_s5, 16  ;;  %s1395_s15 = int_to_ptr.hbm [resolvable:$true] %s1394_s15 }
  0xd9   : > { %s1396_s30 = scalar_lea.hbm %s1395_s15, 8  ;;  %p1401_p13 = scmp.lt.s32.totalorder %s1395_s15, %s1833_s5 }
  0xda   : > { %v832_v50 = vadd.f32 %v831_v49, %v805_v48  ;;  %v864_v51 = vpop.f32.mrf.mxu0  ;;  %p1397_p9 = scmp.ne.s32.totalorder %s1395_s15, %s1396_s30  ;;  %p1402_p2 = scmp.lt.s32.totalorder %s1400_s6, %s1396_s30 }
  0xdc   : > { %v865_v52 = vadd.f32 %v864_v51, %v832_v50  ;;  %p1398_p10 = pnand %p1397_p9, %p1576_p0  ;;  %p1403_p4 = por %p1402_p2, %p1401_p13 }
  0xdd   : > { %v889_v53 = vpop.f32.mrf.mxu1 }
  0xde   : > { %v890_v54 = vadd.f32 %v889_v53, %v865_v52  ;;  %p1399_p12 = pneg %p1398_p10 }
  0xe0   : > { %894 = vst [vmem:[%s311_s12] sm:$0xff] %v890_v54  ;;  %p1404_p7 = pnand %p1403_p4, %p1399_p12 }
  0xe2   : > { %1407 = shalt.err (!%p1404_p7)
}
  0xe3   : > { %1151 = dma.vmem_to_hbm [thread:$0]  (%p1576_p0), %s950_s10, 128, %s952_s21, %s1774_s9  }
  0xe4 PF: > { %s963_s29 = sand.u32 1, %s1450_s18   ;;  %p1167_p11 = pnand %p1121_p6, %p1585_p5 }
  0xe5   : > { %s964_s16 = scalar_lea.sflag [#allocation4], %s963_s29 }
  0xe6   : > { %p1168_p1 = pneg %p1167_p11 }
  0xe8   : > { %1441 = dma.done.wait (%p1168_p1), %s964_s16, 128  }
  0xe9   : > { %1443 = vsyncadd (%p1168_p1), %s964_s16, 4294967168  ;;  %s1839_s7 = sadd.s32 4294967294, %s1470_s23  }
  0xea   : > { %s973_s8 = sand.u32 1, %s1839_s7  }
  0xeb   : > { %s974_s11 = scalar_lea.sflag [#allocation10], %s973_s8 }
  0xec   : > { %1445 = dma.done.wait (%p1168_p1), %s974_s11, 256  }
  0xed   : > { %1447 = vsyncadd (%p1168_p1), %s974_s11, 4294967040  ;;  %s26_s23 = sadd.s32 1, %s1470_s23   ;;  %s1840_s18 = smov %s1454_s19 }
  0xee   : > { %p23_p0 = scmp.ge.s32.totalorder %s26_s23, 4   ;;  %s1841_s19 = smov %s1458_s20 }
  0xef   : > { %s1842_s20 = smov %s1583_s26  ;;  %s1843_s21 = smov %s1466_s22 }
  0xf0   : > { %s1844_s22 = smov %s1846_s13  ;;  %25 = sbr.rel (!%p23_p0) target bundleno = 9 (0x9), region = 117 }
  0xf5   :  { %990 = vsyncpa [#allocation3], 1 }
  0xf6   :  { %992 = vsyncpa [#allocation3 + $0x1], 1 }
  0xf7   :  { %993 = vsyncpa [#allocation6], 1 }
  0xf8   :  { %994 = vsyncpa [#allocation4], 1 }
  0xf9   :  { %996 = vsyncpa [#allocation4 + $0x1], 1 }
  0xfa   :  { %997 = vsyncpa [#allocation10], 1 }
  0xfb   :  { %999 = vsyncpa [#allocation10 + $0x1], 1 }

</bundles_post_ra>
